<compile_context>
chip_gen: v7x
topology: tpu7x:2x2x1
jax: 0.10.0
libtpu: 0.0.40
codegen_flags: <defaults>
</compile_context>

<pallas_src>
import jax
import jax.numpy as jnp
from jax.experimental import pallas as pl
from jax.experimental.pallas import tpu as pltpu

_LANES = 128


def _round_up(x, m):
    return (x + m - 1) // m * m


def _fusion_eval_kernel(gate_ref, low_ref, high_ref, out_ref):
    # gate_ref lives in SMEM (scalar); low/high/out tiles are in VMEM.
    gate = gate_ref[0]
    low = low_ref[...].astype(jnp.float32)
    high = high_ref[...].astype(jnp.float32)
    # gate*low + (1-gate)*high == high + gate*(low - high)
    fused = high + gate * (low - high)
    out_ref[...] = jnp.maximum(fused, 0.0).astype(out_ref.dtype)


def _fusion_train_kernel(gate_ref, mask_ref, low_ref, high_ref, out_ref):
    # Dropout(p=0.5) applied to (ones * gate): each surviving element becomes
    # 2*gate, dropped elements become 0.  mask is 1.0 (keep) / 0.0 (drop).
    two_gate = gate_ref[0] * 2.0
    low = low_ref[...].astype(jnp.float32)
    high = high_ref[...].astype(jnp.float32)
    gate_map = mask_ref[...].astype(jnp.float32) * two_gate
    fused = high + gate_map * (low - high)
    out_ref[...] = jnp.maximum(fused, 0.0).astype(out_ref.dtype)


def feature_fusion(low_feat, high_feat, gate_param, *, training=False, rng_key=None):
    """Pallas implementation of FeatureFusion.forward.

    low_feat, high_feat: NCHW float arrays of identical shape.
    gate_param: scalar parameter (shape (1,) in the PyTorch module).
    training: if True, applies Dropout(p=0.5) to the gate map (vary rng_key per
              step, otherwise the dropout mask is fixed).
    """
    assert low_feat.shape == high_feat.shape
    orig_shape = low_feat.shape
    out_dtype = low_feat.dtype
    total = int(low_feat.size)

    rows = pl.cdiv(total, _LANES)
    # ~0.5 MiB f32 blocks; (8,128)-aligned; 3-4 arrays x 2 buffers stays well
    # under every generation's default scoped-VMEM limit (incl. v7x's 64 MiB).
    tile_r = min(1024, _round_up(rows, 8))
    rows_padded = _round_up(rows, tile_r)
    pad = rows_padded * _LANES - total

    def to2d(x):
        x = x.reshape(-1)
        if pad:
            x = jnp.pad(x, (0, pad))
        return x.reshape(rows_padded, _LANES)

    low2 = to2d(low_feat)
    high2 = to2d(high_feat)
    gate = jnp.asarray(gate_param, jnp.float32).reshape(1)

    grid = (rows_padded // tile_r,)
    tile_spec = pl.BlockSpec((tile_r, _LANES), lambda i: (i, 0))
    smem_spec = pl.BlockSpec(memory_space=pltpu.MemorySpace.SMEM)
    cparams = pltpu.CompilerParams(dimension_semantics=("parallel",))

    if training:
        if rng_key is None:
            rng_key = jax.random.PRNGKey(0)
        # TODO(synk): an in-kernel pltpu.prng_* mask would avoid this extra HBM
        # read, but those primitives have no interpret-mode lowering; the mask
        # is generated host-side instead (RNG stream differs from torch).
        keep = jax.random.bernoulli(rng_key, 0.5, (rows_padded, _LANES))
        keep = keep.astype(low2.dtype)  # 1.0 keep / 0.0 drop, same width as features
        out2 = pl.pallas_call(
            _fusion_train_kernel,
            out_shape=jax.ShapeDtypeStruct((rows_padded, _LANES), out_dtype),
            grid=grid,
            in_specs=[smem_spec, tile_spec, tile_spec, tile_spec],
            out_specs=tile_spec,
            compiler_params=cparams,
        )(gate, keep, low2, high2)
    else:
        out2 = pl.pallas_call(
            _fusion_eval_kernel,
            out_shape=jax.ShapeDtypeStruct((rows_padded, _LANES), out_dtype),
            grid=grid,
            in_specs=[smem_spec, tile_spec, tile_spec],
            out_specs=tile_spec,
            compiler_params=cparams,
        )(gate, low2, high2)

    return out2.reshape(-1)[:total].reshape(orig_shape)


def _reference_eval(low_feat, high_feat, gate_value):
    # Eval-mode reference (dropout == identity).
    gate_map = jnp.ones_like(low_feat) * gate_value
    fused = gate_map * low_feat + (1.0 - gate_map) * high_feat
    return jnp.maximum(fused, 0.0)


if __name__ == "__main__":
    key = jax.random.PRNGKey(0)
    k1, k2, k3, k4 = jax.random.split(key, 4)

    # low/high features: batch=2, channels=4, spatial=16x16 (NCHW).
    low = jax.random.normal(k1, (2, 4, 16, 16), dtype=jnp.float32)
    high = jax.random.normal(k2, (2, 4, 16, 16), dtype=jnp.float32)

    # nn.Parameter(torch.zeros(1)) -> deterministic init to 0.0
    gate0 = jnp.zeros((1,), dtype=jnp.float32)

    # Eval mode (dropout = identity): check against pure-JAX reference.
    out_eval = feature_fusion(low, high, gate0, training=False)
    jax.block_until_ready(out_eval)
    assert jnp.allclose(out_eval, _reference_eval(low, high, 0.0), atol=1e-5), \
        "eval-mode mismatch (gate=0)"

    # Non-trivial gate value to exercise the blend.
    out_eval2 = feature_fusion(low, high, jnp.full((1,), 0.37, jnp.float32), training=False)
    jax.block_until_ready(out_eval2)
    assert jnp.allclose(out_eval2, _reference_eval(low, high, 0.37), atol=1e-5), \
        "eval-mode mismatch (gate=0.37)"

    # Ragged total (not a multiple of 128) exercises the padding path.
    low_r = jax.random.normal(k3, (2, 3, 7, 5), dtype=jnp.float32)
    high_r = jax.random.normal(k4, (2, 3, 7, 5), dtype=jnp.float32)
    out_r = feature_fusion(low_r, high_r, jnp.full((1,), 0.25, jnp.float32), training=False)
    jax.block_until_ready(out_r)
    assert jnp.allclose(out_r, _reference_eval(low_r, high_r, 0.25), atol=1e-5), \
        "eval-mode mismatch (ragged shape)"

    # Training mode: dropout active.  Each element must equal one of the two
    # possible outcomes (mask kept -> gate_map=2*g, dropped -> gate_map=0).
    g = 0.37
    out_train = feature_fusion(low, high, jnp.full((1,), g, jnp.float32),
                               training=True, rng_key=jax.random.PRNGKey(123))
    jax.block_until_ready(out_train)
    assert out_train.shape == low.shape
    cand_drop = jnp.maximum(high, 0.0)
    cand_keep = jnp.maximum(2.0 * g * low + (1.0 - 2.0 * g) * high, 0.0)
    ok = (jnp.isclose(out_train, cand_drop, atol=1e-5)
          | jnp.isclose(out_train, cand_keep, atol=1e-5))
    assert bool(jnp.all(ok)), "training-mode output not consistent with dropout semantics"
    assert bool(jnp.all(out_train >= 0.0)), "ReLU output must be non-negative"

    print("KERNEL_OK")
</pallas_src>

<mosaic_0001>
module attributes {stable_mosaic.version = 11 : i64} {
  func.func @_fusion_eval_kernel(%arg0: i32, %arg1: memref<1xf32, #tpu.memory_space<smem>>, %arg2: memref<16x128xf32, #tpu.memory_space<vmem>>, %arg3: memref<16x128xf32, #tpu.memory_space<vmem>>, %arg4: memref<16x128xf32, #tpu.memory_space<vmem>>) attributes {dimension_semantics = [#tpu.dimension_semantics<parallel>], iteration_bounds = array<i64: 1>, scalar_prefetch = 0 : i64, scratch_operands = 0 : i64, tpu.core_type = #tpu.core_type<tc>, window_params = [{transform_indices = @transform_0, window_bounds = array<i64: 1>}, {transform_indices = @transform_1, window_bounds = array<i64: 16, 128>}, {transform_indices = @transform_2, window_bounds = array<i64: 16, 128>}, {transform_indices = @transform_3, window_bounds = array<i64: 16, 128>}]} {
    %c0 = arith.constant 0 : index
    %0 = memref.load %arg1[%c0] : memref<1xf32, #tpu.memory_space<smem>>
    %c0_0 = arith.constant 0 : index
    %c0_1 = arith.constant 0 : index
    %1 = vector.load %arg2[%c0_0, %c0_1] : memref<16x128xf32, #tpu.memory_space<vmem>>, vector<16x128xf32>
    %c0_2 = arith.constant 0 : index
    %c0_3 = arith.constant 0 : index
    %2 = vector.load %arg3[%c0_2, %c0_3] : memref<16x128xf32, #tpu.memory_space<vmem>>, vector<16x128xf32>
    %3 = arith.subf %1, %2 : vector<16x128xf32>
    %4 = vector.broadcast %0 : f32 to vector<16x128xf32>
    %5 = arith.mulf %4, %3 : vector<16x128xf32>
    %6 = arith.addf %2, %5 : vector<16x128xf32>
    %cst = arith.constant 0.000000e+00 : f32
    %7 = vector.broadcast %cst : f32 to vector<16x128xf32>
    %8 = arith.maximumf %6, %7 : vector<16x128xf32>
    %c0_4 = arith.constant 0 : index
    %c0_5 = arith.constant 0 : index
    %9 = vector.load %arg4[%c0_4, %c0_5] : memref<16x128xf32, #tpu.memory_space<vmem>>, vector<16x128xf32>
    tpu.vector_store %arg4[%c0_4, %c0_5], %8 {strides = array<i32>} : memref<16x128xf32, #tpu.memory_space<vmem>>, vector<16x128xf32>,
    return
  }
  func.func @transform_0(%arg0: i32) -> i32 {
    %c0_i32 = arith.constant 0 : i32
    %c0_i32_0 = arith.constant 0 : i32
    return %c0_i32 : i32
  }
  func.func @transform_1(%arg0: i32) -> (i32, i32) {
    %c0_i32 = arith.constant 0 : i32
    %c0_i32_0 = arith.constant 0 : i32
    return %arg0, %c0_i32 : i32, i32
  }
  func.func @transform_2(%arg0: i32) -> (i32, i32) {
    %c0_i32 = arith.constant 0 : i32
    %c0_i32_0 = arith.constant 0 : i32
    return %arg0, %c0_i32 : i32, i32
  }
  func.func @transform_3(%arg0: i32) -> (i32, i32) {
    %c0_i32 = arith.constant 0 : i32
    %c0_i32_0 = arith.constant 0 : i32
    return %arg0, %c0_i32 : i32, i32
  }
}

</mosaic_0001>

<bundles_post_ra>
// kernel: tpu_custom_call.1
= control target key start
LH: loop header
LB: loop body
LE: loop exit
PB: predicated region body
PF: predicated region fallthrough
CT: control target
= control target key end

     0   :  { %9 = vsyncpa [#allocation4], 0  ;;  %s228_s0 = inlined_call_operand.<no memory space> [shape: f32[1], index: 0, kind: input, shape index: {}]   ;;  %s229_s1 = inlined_call_operand.hbm [shape: f32[16,128], index: 1, kind: input, shape index: {}]   ;;  %s230_s2 = inlined_call_operand.hbm [shape: f32[16,128], index: 2, kind: input, shape index: {}]   ;;  %s231_s3 = inlined_call_operand.hbm [shape: f32[16,128], index: 3, kind: output, shape index: {}]  }
   0x1   :  { %10 = vsyncpa [#allocation7], 0 }
   0x2   :  { %11 = vsyncpa [#allocation5], 0  ;;  %s155_s12 = smov [#allocation3]   ;;  %s83_s16 = scalar_lea.hbm %s229_s1, 256 }
   0x3   :  { %s19_s13 = sshll.u32 %s155_s12, 4  ;;  %p84_p0 = scmp.ne.s32.totalorder %s229_s1, %s83_s16  ;;  %s20_s13 = int_to_ptr.vmem [resolvable:$true] %s19_s13 }
   0x4   :  { %p87_p1 = scmp.lt.u32.totalorder %s83_s16, %s229_s1 }
   0x6   :  { %p89_p2 = pnand %p87_p1, %p84_p0 }
   0x8   :  { %92 = shalt.err (!%p89_p2)
}
   0x9   :  { %s93_s21 = scalar_lea.vmem %s20_s13, 256  ;;  %p98_p4 = scmp.lt.s32.totalorder %s20_s13, %s20_s13 }
   0xa   :  { %p94_p3 = scmp.ne.s32.totalorder %s20_s13, %s93_s21  ;;  %p99_p5 = scmp.lt.s32.totalorder %s93_s21, %s93_s21 }
   0xc   :  { %p100_p6 = por %p99_p5, %p98_p4 }
   0xe   :  { %p101_p7 = pnand %p100_p6, %p94_p3 }
  0x10   :  { %104 = shalt.err (!%p101_p7)
}
  0x11   :  { %s156_s22 = smov 128   ;;  %s157_s23 = smov 8  }
  0x12   :  { %25 = dma.hbm_to_vmem [thread:$0]  %s229_s1, 256, %s20_s13, [#allocation4], %s156_s22, %s156_s22, %s157_s23  }
  0x13   :  { %s158_s26 = smov [#allocation6]   ;;  %s105_s30 = scalar_lea.hbm %s230_s2, 256 }
  0x14   :  { %s31_s27 = sshll.u32 %s158_s26, 4  ;;  %p106_p8 = scmp.ne.s32.totalorder %s230_s2, %s105_s30  ;;  %s32_s27 = int_to_ptr.vmem [resolvable:$true] %s31_s27 }
  0x15   :  { %p109_p9 = scmp.lt.u32.totalorder %s105_s30, %s230_s2 }
  0x17   :  { %p111_p10 = pnand %p109_p9, %p106_p8 }
  0x19   :  { %114 = shalt.err (!%p111_p10)
}
  0x1a   :  { %s115_s8 = scalar_lea.vmem %s32_s27, 256  ;;  %p120_p12 = scmp.lt.s32.totalorder %s32_s27, %s32_s27 }
  0x1b   :  { %p116_p11 = scmp.ne.s32.totalorder %s32_s27, %s115_s8  ;;  %p121_p13 = scmp.lt.s32.totalorder %s115_s8, %s115_s8 }
  0x1d   :  { %p122_p0 = por %p121_p13, %p120_p12 }
  0x1f   :  { %p123_p1 = pnand %p122_p0, %p116_p11 }
  0x21   :  { %126 = shalt.err (!%p123_p1)
}
  0x22   :  { %37 = dma.hbm_to_vmem [thread:$0]  %s230_s2, 256, %s32_s27, [#allocation7], %s156_s22, %s156_s22, %s157_s23  }
  0x23   :  { %149 = dma.done.wait [#allocation4], 256  }
  0x24   :  { %150 = vsyncadd [#allocation4], 4294967040 }
  0x25   :  { %151 = dma.done.wait [#allocation7], 256  }
  0x26   :  { %152 = vsyncadd [#allocation7], 4294967040  ;;  %v45_v0 = vld [vmem:[#allocation3] sm:$0xff]  ;;  %v47_v1 = vld [vmem:[#allocation6] sm:$0xff]  ;;  %v51_v2 = vstv %s228_s0  ;;  %s159_s12 = smov [#allocation8]  }
  0x27   :  { %v46_v3 = vld [vmem:[#allocation3 + $0x8] sm:$0xff]  ;;  %v49_v4 = vsub.f32 %v45_v0, %v47_v1  ;;  %v48_v5 = vld [vmem:[#allocation6 + $0x8] sm:$0xff]  ;;  %s65_s13 = sshll.u32 %s159_s12, 4  ;;  %s66_s13 = int_to_ptr.vmem [resolvable:$true] %s65_s13 }
  0x28   :  { %v50_v6 = vsub.f32 %v46_v3, %v48_v5  ;;  %s127_s2 = scalar_lea.vmem %s66_s13, 256  ;;  %p132_p3 = scmp.lt.s32.totalorder %s66_s13, %s66_s13 }
  0x29   :  { %v52_v7 = vmul.f32 %v51_v2, %v49_v4  ;;  %p128_p2 = scmp.ne.s32.totalorder %s66_s13, %s127_s2  ;;  %p133_p4 = scmp.lt.s32.totalorder %s127_s2, %s127_s2 }
  0x2a   :  { %v53_v8 = vmul.f32 %v51_v2, %v50_v6 }
  0x2b   :  { %v54_v9 = vadd.f32 %v52_v7, %v47_v1  ;;  %p134_p5 = por %p133_p4, %p132_p3 }
  0x2c   :  { %v55_v10 = vadd.f32 %v53_v8, %v48_v5 }
  0x2d   :  { %v56_v11 = vmax.f32 %v54_v9, 0.0  ;;  %p135_p6 = pnand %p134_p5, %p128_p2 }
  0x2e   :  { %v57_v12 = vmax.f32 %v55_v10, 0.0 }
  0x2f   :  { %58 = vst [vmem:[#allocation8] sm:$0xff] %v56_v11 }
  0x30   :  { %59 = vst [vmem:[#allocation8 + $0x8] sm:$0xff] %v57_v12 }
  0x31   :  { %138 = shalt.err (!%p135_p6)
}
  0x32   :  { %s139_s15 = scalar_lea.hbm %s231_s3, 256 }
  0x33   :  { %p140_p7 = scmp.ne.s32.totalorder %s231_s3, %s139_s15  ;;  %p143_p8 = scmp.lt.u32.totalorder %s139_s15, %s231_s3 }
  0x35   :  { %p145_p9 = pnand %p143_p8, %p140_p7 }
  0x37   :  { %148 = shalt.err (!%p145_p9)
}
  0x38   :  { %71 = dma.vmem_to_hbm [thread:$0]  %s66_s13, 256, %s231_s3, [#allocation5], %s156_s22, %s156_s22, %s157_s23  }
  0x39   :  { %153 = dma.done.wait [#allocation5], 256  }
  0x3a   :  { %154 = vsyncadd [#allocation5], 4294967040 }
  0x3b   :  { %75 = vsyncpa [#allocation4], 1 }
  0x3c   :  { %76 = vsyncpa [#allocation7], 1 }
  0x3d   :  { %77 = vsyncpa [#allocation5], 1 }

</bundles_post_ra>
